<compile_context>
chip_gen: v7x
topology: tpu7x:2x2x1
jax: 0.10.0
libtpu: 0.0.40
codegen_flags: <defaults>
</compile_context>

<pallas_src>
import jax
import jax.numpy as jnp
from jax import lax
from jax.experimental import pallas as pl
from jax.experimental.pallas import tpu as pltpu

GROUPS = 32      # nn.GroupNorm(32, in_chans)
EPS = 1e-5       # PyTorch GroupNorm default eps


# ---------------------------------------------------------------------------
# Pass 1: per-channel sum / sumsq, accumulated over pixel tiles.
# ---------------------------------------------------------------------------
def _gn_stats_kernel(x_ref, sum_ref, sumsq_ref):
    # x_ref: (1, C, TP);  sum_ref / sumsq_ref: (1, C, 1) accumulators.
    @pl.when(pl.program_id(1) == 0)
    def _():
        sum_ref[...] = jnp.zeros_like(sum_ref)
        sumsq_ref[...] = jnp.zeros_like(sumsq_ref)

    x = x_ref[0].astype(jnp.float32)                        # (C, TP)
    sum_ref[0] += jnp.sum(x, axis=1, keepdims=True)         # (C, 1)
    sumsq_ref[0] += jnp.sum(x * x, axis=1, keepdims=True)   # (C, 1)


# ---------------------------------------------------------------------------
# Pass 2: normalize + SiLU + fused 4-tap transposed-conv matmul (lane-dense).
# ---------------------------------------------------------------------------
def _tconv_main_kernel(x_ref, scale_ref, shift_ref, wT_ref, bias_ref, o_ref):
    # x_ref:     (1, C, TP)
    # scale_ref: (1, C, 1)   gamma_c * rsqrt(var_g + eps)
    # shift_ref: (1, C, 1)   beta_c - mean_g * scale_c
    # wT_ref:    (R, C)      R = 4*C_out, row r = co*4 + di*2 + dj   (bf16)
    # bias_ref:  (R, 1)      bias[co] repeated per tap               (f32)
    # o_ref:     (1, R, TP)  lane-dense output (pixels on lanes)
    x = x_ref[0].astype(jnp.float32)                  # (C, TP)
    xn = x * scale_ref[0] + shift_ref[0]              # GroupNorm (affine folded)
    sig = pl.reciprocal(1.0 + jnp.exp(-xn), approx=True)   # sigmoid on EUP path
    y = (xn * sig).astype(wT_ref.dtype)               # SiLU, cast to bf16 for MXU
    out = jnp.dot(wT_ref[...], y, preferred_element_type=jnp.float32)   # (R, TP)
    o_ref[0] = (out + bias_ref[...]).astype(o_ref.dtype)


# ---------------------------------------------------------------------------
# Wrapper
# ---------------------------------------------------------------------------
def _choose_tp(P, C, R, budget_bytes=24 << 20):
    """Largest pixel tile (multiple of 128, divides P) whose double-buffered
    f32 input+output blocks stay under ~24 MiB (safe on v5e/v6e/v7x)."""
    if P % 128 != 0:
        return P                                   # small shapes: whole sample
    per_px = 8 * (C + R)                           # 2x f32 in + 2x f32 out
    tp_max = (budget_bytes // per_px) // 128 * 128
    tp_max = max(128, min(4096, int(tp_max)))
    if P <= tp_max:
        return P
    tp = tp_max
    while P % tp != 0:
        tp -= 128
    return tp


def _vmem_limit(block_bytes):
    # 2x headroom over estimated live blocks; clamp to [32 MiB, 56 MiB]
    # (56 MiB stays below v7x's 64 MiB physical VMEM).
    return int(min(max(2 * int(block_bytes) + (8 << 20), 32 << 20), 56 << 20))


def transpose_conv_block2(x, gamma, beta, weight, bias, *, tp=None, layout="nchw"):
    """x: (N, C_in, H, W); weight: (C_in, C_out, 2, 2) (PyTorch ConvTranspose2d)."""
    N, C, H, W = x.shape
    C_out = weight.shape[1]
    R = 4 * C_out
    P = H * W
    assert C % GROUPS == 0, "GroupNorm(32, C) requires C % 32 == 0"
    gs = C // GROUPS

    if tp is None:
        tp = _choose_tp(P, C, R)
    assert P % tp == 0
    num_tp = P // tp

    x2 = x.reshape(N, C, P)

    # -------- pass 1: per-channel statistics (Pallas, reduction over P) ------
    csum, csumsq = pl.pallas_call(
        _gn_stats_kernel,
        out_shape=(jax.ShapeDtypeStruct((N, C, 1), jnp.float32),
                   jax.ShapeDtypeStruct((N, C, 1), jnp.float32)),
        grid=(N, num_tp),
        in_specs=[pl.BlockSpec((1, C, tp), lambda n, p: (n, 0, p))],
        out_specs=[pl.BlockSpec((1, C, 1), lambda n, p: (n, 0, 0)),
                   pl.BlockSpec((1, C, 1), lambda n, p: (n, 0, 0))],
        compiler_params=pltpu.CompilerParams(
            dimension_semantics=("parallel", "arbitrary"),
            vmem_limit_bytes=_vmem_limit(2 * C * tp * 4)),
    )(x2)

    # -------- tiny group combine + fold affine into per-channel scale/shift --
    cnt = gs * P
    gsum = csum.reshape(N, GROUPS, gs).sum(axis=2)
    gsumsq = csumsq.reshape(N, GROUPS, gs).sum(axis=2)
    mean = gsum / cnt
    var = gsumsq / cnt - mean * mean          # E[x^2] - mean^2 (f32, fine here)
    rstd = lax.rsqrt(var + EPS)
    scale_c = jnp.repeat(rstd, gs, axis=1) * gamma[None, :]              # (N, C)
    shift_c = beta[None, :] - jnp.repeat(mean, gs, axis=1) * scale_c     # (N, C)
    scale_c = scale_c.reshape(N, C, 1).astype(jnp.float32)
    shift_c = shift_c.reshape(N, C, 1).astype(jnp.float32)

    # -------- fused tap weights, row r = co*4 + di*2 + dj ---------------------
    wT = weight.transpose(1, 2, 3, 0).reshape(R, C).astype(jnp.bfloat16)
    bias_r = jnp.repeat(bias, 4).reshape(R, 1).astype(jnp.float32)

    # -------- pass 2: normalize + SiLU + fused matmul (Pallas) ----------------
    main_blocks = 2 * (C * tp * 4 + R * tp * 4) + R * C * 2 + 4 * C * 4
    out = pl.pallas_call(
        _tconv_main_kernel,
        out_shape=jax.ShapeDtypeStruct((N, R, P), x.dtype),
        grid=(N, num_tp),
        in_specs=[
            pl.BlockSpec((1, C, tp), lambda n, p: (n, 0, p)),
            pl.BlockSpec((1, C, 1), lambda n, p: (n, 0, 0)),
            pl.BlockSpec((1, C, 1), lambda n, p: (n, 0, 0)),
            pl.BlockSpec((R, C), lambda n, p: (0, 0)),
            pl.BlockSpec((R, 1), lambda n, p: (0, 0)),
        ],
        out_specs=pl.BlockSpec((1, R, tp), lambda n, p: (n, 0, p)),
        compiler_params=pltpu.CompilerParams(
            dimension_semantics=("parallel", "parallel"),
            vmem_limit_bytes=_vmem_limit(main_blocks)),
    )(x2, scale_c, shift_c, wT, bias_r)

    if layout == "tap_major":
        # (N, 4*C_out, H*W), row r = co*4 + di*2 + dj.  Lets a fused downstream
        # consumer skip the NCHW scatter (saves one full HBM round trip).
        return out

    # Scatter taps back to NCHW: out[n, co, 2i+di, 2j+dj].
    out = out.reshape(N, C_out, 2, 2, H, W)      # (n, co, di, dj, i, j)
    out = out.transpose(0, 1, 4, 2, 5, 3)        # (n, co, i, di, j, dj)
    return out.reshape(N, C_out, 2 * H, 2 * W)


# ---------------------------------------------------------------------------
# Plain-JAX reference matching the PyTorch module semantics.
# ---------------------------------------------------------------------------
def ref_forward(x, gamma, beta, weight, bias):
    N, C, H, W = x.shape
    xg = x.reshape(N, GROUPS, -1)
    mean = xg.mean(-1, keepdims=True)
    var = ((xg - mean) ** 2).mean(-1, keepdims=True)
    xn = ((xg - mean) / jnp.sqrt(var + EPS)).reshape(N, C, H, W)
    xn = xn * gamma[None, :, None, None] + beta[None, :, None, None]
    y = xn * jax.nn.sigmoid(xn)
    o = jnp.einsum('ncij,codk->noidjk', y, weight)
    o = o.reshape(N, weight.shape[1], 2 * H, 2 * W) + bias[None, :, None, None]
    return o


if __name__ == "__main__":
    # Small shapes consistent with the module: GroupNorm(32, C) requires C % 32 == 0.
    N, C_in, C_out, H, W = 2, 32, 16, 16, 16

    key = jax.random.PRNGKey(0)
    k_x, k_g, k_b, k_w, k_bias = jax.random.split(key, 5)

    x = jax.random.normal(k_x, (N, C_in, H, W), dtype=jnp.float32)
    gamma = 1.0 + 0.1 * jax.random.normal(k_g, (C_in,), dtype=jnp.float32)
    beta = 0.1 * jax.random.normal(k_b, (C_in,), dtype=jnp.float32)
    weight = 0.05 * jax.random.normal(k_w, (C_in, C_out, 2, 2), dtype=jnp.float32)
    bias = 0.05 * jax.random.normal(k_bias, (C_out,), dtype=jnp.float32)

    ref = jax.block_until_ready(ref_forward(x, gamma, beta, weight, bias))

    # bf16 MXU operands + approx-reciprocal sigmoid -> tolerance ~1e-2.
    TOL = 2e-2

    # Default (auto) pixel tile.
    out = jax.block_until_ready(transpose_conv_block2(x, gamma, beta, weight, bias))
    assert out.shape == (N, C_out, 2 * H, 2 * W), out.shape
    assert jnp.allclose(out, ref, rtol=TOL, atol=TOL), float(jnp.max(jnp.abs(out - ref)))

    # Forced multi-tile pixel axis (exercises the tiled-P + stats-accumulation path).
    out_t = jax.block_until_ready(
        transpose_conv_block2(x, gamma, beta, weight, bias, tp=128))
    assert jnp.allclose(out_t, ref, rtol=TOL, atol=TOL), float(jnp.max(jnp.abs(out_t - ref)))

    print("KERNEL_OK")
</pallas_src>

<mosaic_0001>
module attributes {stable_mosaic.version = 11 : i64} {
  func.func @_gn_stats_kernel(%arg0: i32, %arg1: i32, %arg2: memref<1x32x256xf32, #tpu.memory_space<vmem>>, %arg3: memref<1x32x1xf32, #tpu.memory_space<vmem>>, %arg4: memref<1x32x1xf32, #tpu.memory_space<vmem>>) attributes {dimension_semantics = [#tpu.dimension_semantics<parallel>, #tpu.dimension_semantics<arbitrary>], iteration_bounds = array<i64: 2, 1>, scalar_prefetch = 0 : i64, scratch_operands = 0 : i64, tpu.core_type = #tpu.core_type<tc>, window_params = [{transform_indices = @transform_0, window_bounds = array<i64: 1, 32, 256>}, {transform_indices = @transform_1, window_bounds = array<i64: 1, 32, 1>}, {transform_indices = @transform_2, window_bounds = array<i64: 1, 32, 1>}]} {
    %c0_i32 = arith.constant 0 : i32
    %0 = arith.cmpi eq, %arg1, %c0_i32 : i32
    %1 = arith.extui %0 : i1 to i32
    %c0_i32_0 = arith.constant 0 : i32
    %2 = arith.cmpi ne, %1, %c0_i32_0 : i32
    scf.if %2 {
      %cst_16 = arith.constant 0.000000e+00 : f32
      %22 = vector.broadcast %cst_16 : f32 to vector<1x32x1xf32>
      %c0_17 = arith.constant 0 : index
      %c0_18 = arith.constant 0 : index
      %c0_19 = arith.constant 0 : index
      %23 = vector.load %arg3[%c0_17, %c0_18, %c0_19] : memref<1x32x1xf32, #tpu.memory_space<vmem>>, vector<1x32x1xf32>
      tpu.vector_store %arg3[%c0_17, %c0_18, %c0_19], %22 {strides = array<i32>} : memref<1x32x1xf32, #tpu.memory_space<vmem>>, vector<1x32x1xf32>,
      %cst_20 = arith.constant 0.000000e+00 : f32
      %24 = vector.broadcast %cst_20 : f32 to vector<1x32x1xf32>
      %c0_21 = arith.constant 0 : index
      %c0_22 = arith.constant 0 : index
      %c0_23 = arith.constant 0 : index
      %25 = vector.load %arg4[%c0_21, %c0_22, %c0_23] : memref<1x32x1xf32, #tpu.memory_space<vmem>>, vector<1x32x1xf32>
      tpu.vector_store %arg4[%c0_21, %c0_22, %c0_23], %24 {strides = array<i32>} : memref<1x32x1xf32, #tpu.memory_space<vmem>>, vector<1x32x1xf32>,
    } else {
    }
    %c0 = arith.constant 0 : index
    %c0_1 = arith.constant 0 : index
    %c0_2 = arith.constant 0 : index
    %3 = vector.load %arg2[%c0, %c0_1, %c0_2] : memref<1x32x256xf32, #tpu.memory_space<vmem>>, vector<1x32x256xf32>
    %4 = vector.shape_cast %3 : vector<1x32x256xf32> to vector<32x256xf32>
    %c0_3 = arith.constant 0 : index
    %c0_4 = arith.constant 0 : index
    %c0_5 = arith.constant 0 : index
    %5 = vector.load %arg3[%c0_3, %c0_4, %c0_5] : memref<1x32x1xf32, #tpu.memory_space<vmem>>, vector<1x32x1xf32>
    %6 = vector.shape_cast %5 : vector<1x32x1xf32> to vector<32x1xf32>
    %cst = arith.constant dense<0.000000e+00> : vector<32xf32>
    %7 = vector.multi_reduction <add>, %4, %cst [1] : vector<32x256xf32> to vector<32xf32>
    %8 = vector.shape_cast %7 : vector<32xf32> to vector<32x1xf32>
    %9 = arith.addf %6, %8 : vector<32x1xf32>
    %c0_6 = arith.constant 0 : index
    %c0_7 = arith.constant 0 : index
    %c0_8 = arith.constant 0 : index
    %10 = vector.load %arg3[%c0_6, %c0_7, %c0_8] : memref<1x32x1xf32, #tpu.memory_space<vmem>>, vector<1x32x1xf32>
    %11 = vector.shape_cast %10 : vector<1x32x1xf32> to vector<32x1xf32>
    %12 = vector.shape_cast %9 : vector<32x1xf32> to vector<1x32x1xf32>
    tpu.vector_store %arg3[%c0_6, %c0_7, %c0_8], %12 {strides = array<i32>} : memref<1x32x1xf32, #tpu.memory_space<vmem>>, vector<1x32x1xf32>,
    %c0_9 = arith.constant 0 : index
    %c0_10 = arith.constant 0 : index
    %c0_11 = arith.constant 0 : index
    %13 = vector.load %arg4[%c0_9, %c0_10, %c0_11] : memref<1x32x1xf32, #tpu.memory_space<vmem>>, vector<1x32x1xf32>
    %14 = vector.shape_cast %13 : vector<1x32x1xf32> to vector<32x1xf32>
    %15 = arith.mulf %4, %4 : vector<32x256xf32>
    %cst_12 = arith.constant dense<0.000000e+00> : vector<32xf32>
    %16 = vector.multi_reduction <add>, %15, %cst_12 [1] : vector<32x256xf32> to vector<32xf32>
    %17 = vector.shape_cast %16 : vector<32xf32> to vector<32x1xf32>
    %18 = arith.addf %14, %17 : vector<32x1xf32>
    %c0_13 = arith.constant 0 : index
    %c0_14 = arith.constant 0 : index
    %c0_15 = arith.constant 0 : index
    %19 = vector.load %arg4[%c0_13, %c0_14, %c0_15] : memref<1x32x1xf32, #tpu.memory_space<vmem>>, vector<1x32x1xf32>
    %20 = vector.shape_cast %19 : vector<1x32x1xf32> to vector<32x1xf32>
    %21 = vector.shape_cast %18 : vector<32x1xf32> to vector<1x32x1xf32>
    tpu.vector_store %arg4[%c0_13, %c0_14, %c0_15], %21 {strides = array<i32>} : memref<1x32x1xf32, #tpu.memory_space<vmem>>, vector<1x32x1xf32>,
    return
  }
  func.func @transform_0(%arg0: i32, %arg1: i32) -> (i32, i32, i32) {
    %c0_i32 = arith.constant 0 : i32
    %c0_i32_0 = arith.constant 0 : i32
    return %arg0, %c0_i32, %arg1 : i32, i32, i32
  }
  func.func @transform_1(%arg0: i32, %arg1: i32) -> (i32, i32, i32) {
    %c0_i32 = arith.constant 0 : i32
    %c0_i32_0 = arith.constant 0 : i32
    %c0_i32_1 = arith.constant 0 : i32
    return %arg0, %c0_i32, %c0_i32_0 : i32, i32, i32
  }
  func.func @transform_2(%arg0: i32, %arg1: i32) -> (i32, i32, i32) {
    %c0_i32 = arith.constant 0 : i32
    %c0_i32_0 = arith.constant 0 : i32
    %c0_i32_1 = arith.constant 0 : i32
    return %arg0, %c0_i32, %c0_i32_0 : i32, i32, i32
  }
}

</mosaic_0001>

<bundles_post_ra>
// kernel: tpu_custom_call.1
= control target key start
LH: loop header
LB: loop body
LE: loop exit
PB: predicated region body
PF: predicated region fallthrough
CT: control target
= control target key end

     0   :  { %8 = vsyncpa [#allocation3], 0  ;;  %s738_s0 = inlined_call_operand.hbm [shape: f32[2,32,256], index: 0, kind: input, shape index: {}]   ;;  %s739_s1 = inlined_call_operand.vmem [shape: f32[2,32,1], index: 1, kind: output, shape index: {0}]   ;;  %s740_s2 = inlined_call_operand.vmem [shape: f32[2,32,1], index: 2, kind: output, shape index: {1}]  }
   0x1   :  { %10 = vsyncpa [#allocation3 + $0x1], 0  ;;  %s560_s9 = smov 0   ;;  %s562_s10 = smov 0  }
   0x2   :  { %s564_s11 = smov 0   ;;  %s566_s12 = smov 0  }
   0x3   :  { %s568_s13 = smov 0   ;;  %s570_s14 = smov 0  }
   0x4 LB: > { %s383_s15 = sadd.s32 4294967295, %s539_s14   ;;  %s28_s16 = sadd.s32 1, %s535_s13  ;;  %s539_s14 = sphi %s570_s14, %s16_s14   ;;  %s535_s13 = sphi %s568_s13, %s748_s13   ;;  %s531_s12 = sphi %s566_s12, %s747_s12   ;;  %s527_s11 = sphi %s564_s11, %s746_s11   ;;  %s523_s10 = sphi %s562_s10, %s745_s10   ;;  %s519_s9 = sphi %s560_s9, %s744_s9  }
   0x5   : > { %p30_p0 = scmp.ge.s32.totalorder %s28_s16, 2  ;;  %s37_s17 = sadd.s32 1, %s527_s11 }
   0x6   : > { %p44_p1 = scmp.ne.s32.totalorder %s527_s11, %s523_s10  ;;  %p45_p2 = scmp.eq.s32.totalorder %s539_s14, 0 }
   0x7   : > { %s750_s16 = smov (%p30_p0, %s28_s16), 0  ;;  %p50_p4 = scmp.ne.s32.totalorder %s523_s10, %s519_s9 }
   0x8   : > { %p596_p3 = por %p45_p2, %p44_p1  ;;  %s32_s19 = ssub.s32 %s535_s13, %s750_s16 }
   0x9   : > { %p51_p5 = scmp.eq.s32.totalorder %s383_s15, 0  ;;  %p35_p6 = scmp.eq.s32.totalorder %s32_s19, 0 }
   0xa   : > { %p407_p8 = scmp.lt.s32.totalorder %s539_s14, 2  ;;  %s126_s22 = sand.u32 1, %s527_s11  }
   0xb   : > { %p603_p7 = por %p51_p5, %p50_p4  ;;  %s398_s23 = sshll.u32 %s535_s13, 10 }
   0xc   : > { %s609_s21 = scalar_select %p35_p6, %s527_s11, %s37_s17  }
   0xd   : > { %s387_s24 = sshll.u32 %s126_s22, 6  ;;  %s616_s27 = scalar_lea.hbm %s738_s0, %s398_s23 }
   0xe   : > { %s130_s28 = scalar_lea.vmem [#allocation2], %s387_s24  ;;  %p620_p9 = pnand %p407_p8, %p596_p3 }
   0xf   : > { %s139_s29 = sshll.u32 %s130_s28, 4  ;;  %s626_s3 = scalar_lea.sflag [#allocation3], %s126_s22  ;;  %s624_s29 = int_to_ptr.vmem [resolvable:$true] %s139_s29 }
  0x10   : > { %s459_s4 = scalar_lea.hbm %s616_s27, 1024  ;;  %p461_p11 = pneg %p620_p9 }
  0x11   : > { %p460_p10 = scmp.ne.s32.totalorder %s616_s27, %s459_s4  ;;  %s464_s7 = scalar_lea.hbm %s738_s0, 2048 }
  0x12   : > { %p465_p0 = scmp.lt.u32.totalorder %s616_s27, %s738_s0  ;;  %p466_p1 = scmp.lt.u32.totalorder %s464_s7, %s459_s4 }
  0x13   : > { %p462_p12 = pnand %p461_p11, %p460_p10  ;;  %p468_p3 = scmp.lt.u32.totalorder %s459_s4, %s616_s27 }
  0x14   : > { %p467_p2 = por %p466_p1, %p465_p0 }
  0x15   : > { %p463_p13 = pneg %p462_p12 }
  0x16   : > { %p469_p4 = por %p468_p3, %p467_p2 }
  0x18   : > { %p470_p5 = pnand %p469_p4, %p463_p13 }
  0x1a   : > { %473 = shalt.err (!%p470_p5)
}
  0x1b   : > { %s474_s15 = scalar_lea.vmem %s624_s29, 1024  ;;  %s541_s17 = smov [#allocation2]  }
  0x1c   : > { %p475_p6 = scmp.ne.s32.totalorder %s624_s29, %s474_s15  ;;  %s479_s18 = sshll.u32 %s541_s17, 4  ;;  %s480_s18 = int_to_ptr.vmem [resolvable:$false] %s479_s18 }
  0x1d   : > { %s481_s19 = scalar_lea.vmem %s480_s18, 2048  ;;  %p482_p12 = scmp.lt.s32.totalorder %s624_s29, %s480_s18 }
  0x1e   : > { %p477_p8 = pnand %p475_p6, %p461_p11  ;;  %p483_p0 = scmp.lt.s32.totalorder %s481_s19, %s474_s15 }
  0x20   : > { %p478_p10 = pneg %p477_p8  ;;  %p484_p1 = por %p483_p0, %p482_p12 }
  0x22   : > { %p485_p2 = pnand %p484_p1, %p478_p10 }
  0x24   : > { %488 = shalt.err (!%p485_p2)
}
  0x25   : > { %s542_s22 = smov 256   ;;  %s543_s23 = smov 16  }
  0x26   : > { %406 = dma.hbm_to_vmem [thread:$0]  (!%p620_p9), %s616_s27, 1024, %s624_s29, %s626_s3, %s542_s22, %s542_s22, %s543_s23  }
  0x27   : > { %p390_p11 = scmp.ge.s32.totalorder %s539_s14, 1  ;;  %p147_p13 = scmp.lt.s32.totalorder %s539_s14, 3 }
  0x29   : > { %p148_p3 = pnand %p390_p11, %p147_p13 }
  0x2a   : > { %s153_s24 = sand.u32 (!%p148_p3), 1, %s523_s10  }
  0x2b   : > { %151 = sbr.rel (%p148_p3) target bundleno = 212 (0xd4), region = 24  ;;  %s391_s25 = sshll.u32 (!%p148_p3), %s153_s24, 6 }
  0x2c   : > { %s154_s26 = scalar_lea.sflag (!%p148_p3), [#allocation3], %s153_s24  ;;  %s157_s28 = scalar_lea.vmem (!%p148_p3), [#allocation2], %s391_s25 }
  0x32   : > { %514 = dma.done.wait (%p603_p7), %s154_s26, 1024  }
  0x33   : > { %516 = vsyncadd (%p603_p7), %s154_s26, 4294966272  ;;  %p184_p4 = scmp.lt.s32.totalorder %s531_s12, 1  ;;  %vm198_vm0 = vcmask 7168   ;;  %v544_v0 = vmov 0.0   ;;  %v211_v1 = vld [vmem:[%s157_s28 + $0x20] sm:$0xff]  ;;  %v212_v2 = vld [vmem:[%s157_s28 + $0x28] sm:$0xff] }
  0x34   : > { %v207_v3 = vld [vmem:[%s157_s28] sm:$0xff]  ;;  %v225_v4 = vadd.f32 %v212_v2, %v211_v1  ;;  %v208_v5 = vld [vmem:[%s157_s28 + $0x8] sm:$0xff]  ;;  %v213_v6 = vld [vmem:[%s157_s28 + $0x30] sm:$0xff]  ;;  %v248_v20 = vmul.f32 %v211_v1, %v211_v1  ;;  %v249_v21 = vmul.f32 %v212_v2, %v212_v2 }
  0x35   : > { %s752_s12 = smov (!%p184_p4, %s531_s12), 1  ;;  %v214_v7 = vld [vmem:[%s157_s28 + $0x38] sm:$0xff]  ;;  %v219_v8 = vadd.f32 %v208_v5, %v207_v3  ;;  %v209_v9 = vld [vmem:[%s157_s28 + $0x10] sm:$0xff]  ;;  %v244_v14 = vmul.f32 %v207_v3, %v207_v3  ;;  %v245_v15 = vmul.f32 %v208_v5, %v208_v5  ;;  %v250_v18 = vmul.f32 %v213_v6, %v213_v6 }
  0x36   : > { %s399_s27 = sshll.u32 %s752_s12, 5  ;;  %v210_v10 = vld [vmem:[%s157_s28 + $0x18] sm:$0xff]  ;;  %226 = vadd.xlane.f32.xlu1 %v225_v4  ;;  %v228_v11 = vadd.f32 %v214_v7, %v213_v6  ;;  %v246_v12 = vmul.f32 %v209_v9, %v209_v9  ;;  %v251_v19 = vmul.f32 %v214_v7, %v214_v7  ;;  %v258_v24 = vadd.f32 %v249_v21, %v248_v20 }
  0x37   : > { %s671_s3 = scalar_lea.vmem %s739_s1, %s399_s27  ;;  %v247_v13 = vmul.f32 %v210_v10, %v210_v10  ;;  %220 = vadd.xlane.f32.xlu0 %v219_v8  ;;  %v222_v16 = vadd.f32 %v210_v10, %v209_v9  ;;  %v252_v22 = vadd.f32 %v245_v15, %v244_v14  ;;  %s686_s5 = scalar_lea.vmem %s740_s2, %s399_s27 }
  0x38   : > { %201 = vst.msk [vmem:[%s671_s3 + $0x10] sm:$0xff] %vm198_vm0, %v544_v0  ;;  %199 = vst.msk [vmem:[%s671_s3] sm:$0xff] %vm198_vm0, %v544_v0  ;;  %v261_v23 = vadd.f32 %v251_v19, %v250_v18 }
  0x39   : > { %200 = vst.msk [vmem:[%s671_s3 + $0x8] sm:$0xff] %vm198_vm0, %v544_v0  ;;  %202 = vst.msk [vmem:[%s671_s3 + $0x18] sm:$0xff] %vm198_vm0, %v544_v0  ;;  %v255_v17 = vadd.f32 %v247_v13, %v246_v12 }
  0x3a   : > { %229 = vadd.xlane.f32.xlu1 %v228_v11  ;;  %204 = vst.msk [vmem:[%s686_s5 + $0x8] sm:$0xff] %vm198_vm0, %v544_v0  ;;  %203 = vst.msk [vmem:[%s686_s5] sm:$0xff] %vm198_vm0, %v544_v0 }
  0x3b   : > { %223 = vadd.xlane.f32.xlu0 %v222_v16  ;;  %205 = vst.msk [vmem:[%s686_s5 + $0x10] sm:$0xff] %vm198_vm0, %v544_v0  ;;  %206 = vst.msk [vmem:[%s686_s5 + $0x18] sm:$0xff] %vm198_vm0, %v544_v0 }
  0x3e   : > { %256 = vadd.xlane.f32.xlu1 %v255_v17 }
  0x3f   : > { %253 = vadd.xlane.f32.xlu0 %v252_v22  ;;  %v217_v25 = vld [vmem:[%s671_s3 + $0x10] sm:$0xff]  ;;  %v215_v26 = vld [vmem:[%s671_s3] sm:$0xff] }
  0x40   : > { %v218_v31 = vld [vmem:[%s671_s3 + $0x18] sm:$0xff]  ;;  %v216_v32 = vld [vmem:[%s671_s3 + $0x8] sm:$0xff] }
  0x41   : > { %v241_v37 = vld [vmem:[%s686_s5 + $0x8] sm:$0xff]  ;;  %v240_v38 = vld [vmem:[%s686_s5] sm:$0xff] }
  0x42   : > { %262 = vadd.xlane.f32.xlu1 %v261_v23  ;;  %v243_v43 = vld [vmem:[%s686_s5 + $0x18] sm:$0xff]  ;;  %v242_v44 = vld [vmem:[%s686_s5 + $0x10] sm:$0xff] }
  0x43   : > { %259 = vadd.xlane.f32.xlu0 %v258_v24 }
  0xc3   : > { %v227_v27 = vpop.xlane.xlu1 %226 }
  0xc4   : > { %v233_v28 = vadd.f32 %v227_v27, %v217_v25  ;;  %v221_v29 = vpop.xlane.xlu0 %220 }
  0xc5   : > { %v231_v30 = vadd.f32 %v221_v29, %v215_v26 }
  0xc6   : > { %238 = vst.msk [vmem:[%s671_s3 + $0x10] sm:$0xff] %vm198_vm0, %v233_v28 }
  0xc7   : > { %236 = vst.msk [vmem:[%s671_s3] sm:$0xff] %vm198_vm0, %v231_v30  ;;  %v230_v33 = vpop.xlane.xlu1 %229 }
  0xc8   : > { %v234_v34 = vadd.f32 %v230_v33, %v218_v31  ;;  %v224_v35 = vpop.xlane.xlu0 %223 }
  0xc9   : > { %v232_v36 = vadd.f32 %v224_v35, %v216_v32 }
  0xca   : > { %239 = vst.msk [vmem:[%s671_s3 + $0x18] sm:$0xff] %vm198_vm0, %v234_v34 }
  0xcb   : > { %237 = vst.msk [vmem:[%s671_s3 + $0x8] sm:$0xff] %vm198_vm0, %v232_v36  ;;  %v257_v39 = vpop.xlane.xlu1 %256 }
  0xcc   : > { %v265_v40 = vadd.f32 %v257_v39, %v241_v37  ;;  %v254_v41 = vpop.xlane.xlu0 %253 }
  0xcd   : > { %v264_v42 = vadd.f32 %v254_v41, %v240_v38 }
  0xce   : > { %269 = vst.msk [vmem:[%s686_s5 + $0x8] sm:$0xff] %vm198_vm0, %v265_v40 }
  0xcf   : > { %268 = vst.msk [vmem:[%s686_s5] sm:$0xff] %vm198_vm0, %v264_v42  ;;  %v263_v45 = vpop.xlane.xlu1 %262 }
  0xd0   : > { %v267_v46 = vadd.f32 %v263_v45, %v243_v43  ;;  %v260_v47 = vpop.xlane.xlu0 %259 }
  0xd1   : > { %v266_v48 = vadd.f32 %v260_v47, %v242_v44 }
  0xd2   : > { %271 = vst.msk [vmem:[%s686_s5 + $0x18] sm:$0xff] %vm198_vm0, %v267_v46 }
  0xd3   : > { %270 = vst.msk [vmem:[%s686_s5 + $0x10] sm:$0xff] %vm198_vm0, %v266_v48 }
  0xd4 PF: > { %s16_s14 = sadd.s32 1, %s539_s14   ;;  %s744_s9 = smov %s523_s10 }
  0xd5   : > { %p13_p7 = scmp.ge.s32.totalorder %s16_s14, 4   ;;  %s745_s10 = smov %s527_s11 }
  0xd6   : > { %s746_s11 = smov %s609_s21  ;;  %s747_s12 = smov %s535_s13 }
  0xd7   : > { %s748_s13 = smov %s750_s16  ;;  %15 = sbr.rel (!%p13_p7) target bundleno = 4 (0x4), region = 80 }
  0xde   :  { %309 = vsyncpa [#allocation3], 1 }
  0xdf   :  { %311 = vsyncpa [#allocation3 + $0x1], 1 }

</bundles_post_ra>
